<compile_context>
chip_gen: v5e
topology: v5e:2x2
jax: 0.10.0
libtpu: 0.0.40
codegen_flags: <defaults>
</compile_context>

<pallas_src>
import jax
import jax.numpy as jnp
from jax.experimental import pallas as pl
from jax.experimental.pallas import tpu as pltpu


def basic_evaluator_kernel(x_ref,    # (bt, K_in)   [obs_flat | complementary | proportions]
                           w1_ref,   # (K_in, K_mid) block-diag extractor weight + identity
                           b1_ref,   # (1, K_mid)    tiled extractor bias (zeros on aux cols)
                           w2_ref,   # (K_mid, Nout) second Linear weight (transposed)
                           b2_ref,   # (1, Nout)     second Linear bias
                           out_ref): # (bt, Nout)
    h = jnp.dot(x_ref[...], w1_ref[...],
                preferred_element_type=jnp.float32) + b1_ref[...]
    out_ref[...] = (jnp.dot(h, w2_ref[...],
                            preferred_element_type=jnp.float32)
                    + b2_ref[...]).astype(out_ref.dtype)


def _round_up(x, m):
    return (x + m - 1) // m * m


def basic_evaluator(market_state, proportions_state, complementary_state, params,
                    batch_tile=256):
    """market_state: (B, S, P, O) float32 (same axis convention as the PyTorch module)."""
    B, S, P, O = market_state.shape
    D = P * O
    w_ext, b_ext = params["w_ext"], params["b_ext"]     # (E, D), (E,)  torch Linear layout
    w_lin, b_lin = params["w_lin"], params["b_lin"]     # (Nout, S*E + C + S), (Nout,)
    E = w_ext.shape[0]
    Nout = w_lin.shape[0]
    C = complementary_state.shape[1]
    A = C + S                      # auxiliary (complementary + proportions) width
    K_in = S * D + A               # kernel input width
    K_mid = S * E + A              # width after the (augmented) extractor

    f32 = jnp.float32

    # ---- wrapper-side weight plumbing (pure layout / exact arithmetic) ----
    # W1 = [[blockdiag(w_ext.T) x S ,  0    ]
    #       [        0              ,  I_A  ]]          (K_in, K_mid)
    w_ext_bd = jnp.kron(jnp.eye(S, dtype=f32), w_ext.T.astype(f32))          # (S*D, S*E)
    top = jnp.concatenate([w_ext_bd, jnp.zeros((S * D, A), f32)], axis=1)
    bot = jnp.concatenate([jnp.zeros((A, S * E), f32), jnp.eye(A, dtype=f32)], axis=1)
    w1 = jnp.concatenate([top, bot], axis=0)                                 # (K_in, K_mid)
    b1 = jnp.concatenate([jnp.tile(b_ext.astype(f32), S),
                          jnp.zeros((A,), f32)]).reshape(1, K_mid)

    w2 = w_lin.T.astype(f32)                                                 # (K_mid, Nout)
    b2 = b_lin.astype(f32).reshape(1, Nout)

    # single flat input:  [obs_flat (S*D) | complementary (C) | proportions (S)]
    x = jnp.concatenate([market_state.reshape(B, S * D).astype(f32),
                         complementary_state.astype(f32),
                         proportions_state.astype(f32)], axis=1)             # (B, K_in)

    # batch tiling: sublane dim of every block must be a multiple of 8
    bt = min(batch_tile, _round_up(B, 8))
    Bp = _round_up(B, bt)
    if Bp != B:
        x = jnp.pad(x, ((0, Bp - B), (0, 0)))
    grid = (Bp // bt,)

    out = pl.pallas_call(
        basic_evaluator_kernel,
        grid=grid,
        in_specs=[
            pl.BlockSpec((bt, K_in), lambda i: (i, 0)),     # streamed over batch
            pl.BlockSpec((K_in, K_mid), lambda i: (0, 0)),  # resident weights
            pl.BlockSpec((1, K_mid), lambda i: (0, 0)),
            pl.BlockSpec((K_mid, Nout), lambda i: (0, 0)),
            pl.BlockSpec((1, Nout), lambda i: (0, 0)),
        ],
        out_specs=pl.BlockSpec((bt, Nout), lambda i: (i, 0)),
        out_shape=jax.ShapeDtypeStruct((Bp, Nout), jnp.float32),
        compiler_params=pltpu.CompilerParams(
            dimension_semantics=("parallel",)),             # v7x: 2 TCs split the batch
    )(x, w1, b1, w2, b2)

    return out[:B]


def reference(market_state, proportions_state, complementary_state, params):
    """Pure-JAX reproduction of the PyTorch forward (for correctness check)."""
    B, S, P, O = market_state.shape
    obs = market_state.reshape(B, S, P * O)
    feat = obs @ params["w_ext"].T + params["b_ext"]              # (B, S, E)
    feat_flat = feat.reshape(B, -1)                               # (B, S*E)
    cat = jnp.concatenate(
        [feat_flat, complementary_state, proportions_state], axis=1)
    return cat @ params["w_lin"].T + params["b_lin"]


def _make_inputs(key, B, S, P, O, C, E, NOUT):
    D = P * O
    LIN_IN = S * E + S + C
    k_m, k_p, k_c, k_we, k_be, k_wl, k_bl = jax.random.split(key, 7)
    market_state = jax.random.normal(k_m, (B, S, P, O), dtype=jnp.float32)
    proportions_state = jax.random.normal(k_p, (B, S), dtype=jnp.float32)
    complementary_state = jax.random.normal(k_c, (B, C), dtype=jnp.float32)
    ext_bound = 1.0 / jnp.sqrt(jnp.float32(D))
    lin_bound = 1.0 / jnp.sqrt(jnp.float32(LIN_IN))
    params = {
        "w_ext": jax.random.uniform(k_we, (E, D), jnp.float32, -ext_bound, ext_bound),
        "b_ext": jax.random.uniform(k_be, (E,), jnp.float32, -ext_bound, ext_bound),
        "w_lin": jax.random.uniform(k_wl, (NOUT, LIN_IN), jnp.float32, -lin_bound, lin_bound),
        "b_lin": jax.random.uniform(k_bl, (NOUT,), jnp.float32, -lin_bound, lin_bound),
    }
    return market_state, proportions_state, complementary_state, params


if __name__ == "__main__":
    # small shapes implied by the module
    B = 2                    # batch
    S = 4                    # num_symbols
    P = 4                    # num_properties
    O = 8                    # num_observations
    C = 6                    # num_complementary_data
    E = 16                   # num_extractor_outputs
    NOUT = 8                 # num_evaluator_outputs

    key = jax.random.PRNGKey(0)

    # --- tiny batch (module's nominal use) ---
    ms, ps, cs, params = _make_inputs(key, B, S, P, O, C, E, NOUT)
    out = basic_evaluator(ms, ps, cs, params)
    out = jax.block_until_ready(out)
    ref = reference(ms, ps, cs, params)
    assert out.shape == (B, NOUT), out.shape
    assert jnp.allclose(out, ref, atol=1e-5, rtol=1e-5), (out, ref)

    # --- larger batch: exercises the tiled / "parallel" grid path ---
    B_big = 300
    ms2, ps2, cs2, params2 = _make_inputs(jax.random.PRNGKey(1), B_big, S, P, O, C, E, NOUT)
    out2 = jax.block_until_ready(basic_evaluator(ms2, ps2, cs2, params2))
    ref2 = reference(ms2, ps2, cs2, params2)
    assert out2.shape == (B_big, NOUT), out2.shape
    assert jnp.allclose(out2, ref2, atol=1e-5, rtol=1e-5), "batched path mismatch"

    print("KERNEL_OK")
</pallas_src>

<mosaic_0001>
module attributes {stable_mosaic.version = 11 : i64} {
  func.func @basic_evaluator_kernel(%arg0: i32, %arg1: memref<8x138xf32, #tpu.memory_space<vmem>>, %arg2: memref<138x74xf32, #tpu.memory_space<vmem>>, %arg3: memref<1x74xf32, #tpu.memory_space<vmem>>, %arg4: memref<74x8xf32, #tpu.memory_space<vmem>>, %arg5: memref<1x8xf32, #tpu.memory_space<vmem>>, %arg6: memref<8x8xf32, #tpu.memory_space<vmem>>) attributes {dimension_semantics = [#tpu.dimension_semantics<parallel>], iteration_bounds = array<i64: 1>, scalar_prefetch = 0 : i64, scratch_operands = 0 : i64, tpu.core_type = #tpu.core_type<tc>, window_params = [{transform_indices = @transform_0, window_bounds = array<i64: 8, 138>}, {pipeline_mode = #tpu.pipeline_mode<synchronous>, transform_indices = @transform_1, window_bounds = array<i64: 138, 74>}, {pipeline_mode = #tpu.pipeline_mode<synchronous>, transform_indices = @transform_2, window_bounds = array<i64: 1, 74>}, {pipeline_mode = #tpu.pipeline_mode<synchronous>, transform_indices = @transform_3, window_bounds = array<i64: 74, 8>}, {pipeline_mode = #tpu.pipeline_mode<synchronous>, transform_indices = @transform_4, window_bounds = array<i64: 1, 8>}, {transform_indices = @transform_5, window_bounds = array<i64: 8, 8>}]} {
    %c0 = arith.constant 0 : index
    %c0_0 = arith.constant 0 : index
    %0 = vector.load %arg1[%c0, %c0_0] : memref<8x138xf32, #tpu.memory_space<vmem>>, vector<8x138xf32>
    %c0_1 = arith.constant 0 : index
    %c0_2 = arith.constant 0 : index
    %1 = vector.load %arg2[%c0_1, %c0_2] : memref<138x74xf32, #tpu.memory_space<vmem>>, vector<138x74xf32>
    %cst = arith.constant dense<0.000000e+00> : vector<8x74xf32>
    %2 = tpu.matmul %0, %1, %cst {dimension_numbers = #tpu.dot_dimension_numbers<[1], [0], [0], [1], [0, 0, 1, 1], [], []>} : vector<8x138xf32>, vector<138x74xf32>, vector<8x74xf32> -> vector<8x74xf32>
    %c0_3 = arith.constant 0 : index
    %c0_4 = arith.constant 0 : index
    %3 = vector.load %arg3[%c0_3, %c0_4] : memref<1x74xf32, #tpu.memory_space<vmem>>, vector<1x74xf32>
    %4 = vector.broadcast %3 : vector<1x74xf32> to vector<8x74xf32>
    %5 = arith.addf %2, %4 : vector<8x74xf32>
    %c0_5 = arith.constant 0 : index
    %c0_6 = arith.constant 0 : index
    %6 = vector.load %arg4[%c0_5, %c0_6] : memref<74x8xf32, #tpu.memory_space<vmem>>, vector<74x8xf32>
    %cst_7 = arith.constant dense<0.000000e+00> : vector<8x8xf32>
    %7 = tpu.matmul %5, %6, %cst_7 {dimension_numbers = #tpu.dot_dimension_numbers<[1], [0], [0], [1], [0, 0, 1, 1], [], []>} : vector<8x74xf32>, vector<74x8xf32>, vector<8x8xf32> -> vector<8x8xf32>
    %c0_8 = arith.constant 0 : index
    %c0_9 = arith.constant 0 : index
    %8 = vector.load %arg5[%c0_8, %c0_9] : memref<1x8xf32, #tpu.memory_space<vmem>>, vector<1x8xf32>
    %9 = vector.broadcast %8 : vector<1x8xf32> to vector<8x8xf32>
    %10 = arith.addf %7, %9 : vector<8x8xf32>
    %c0_10 = arith.constant 0 : index
    %c0_11 = arith.constant 0 : index
    %11 = vector.load %arg6[%c0_10, %c0_11] : memref<8x8xf32, #tpu.memory_space<vmem>>, vector<8x8xf32>
    tpu.vector_store %arg6[%c0_10, %c0_11], %10 {strides = array<i32>} : memref<8x8xf32, #tpu.memory_space<vmem>>, vector<8x8xf32>,
    return
  }
  func.func @transform_0(%arg0: i32) -> (i32, i32) {
    %c0_i32 = arith.constant 0 : i32
    %c0_i32_0 = arith.constant 0 : i32
    return %arg0, %c0_i32 : i32, i32
  }
  func.func @transform_1(%arg0: i32) -> (i32, i32) {
    %c0_i32 = arith.constant 0 : i32
    %c0_i32_0 = arith.constant 0 : i32
    %c0_i32_1 = arith.constant 0 : i32
    return %c0_i32, %c0_i32_0 : i32, i32
  }
  func.func @transform_2(%arg0: i32) -> (i32, i32) {
    %c0_i32 = arith.constant 0 : i32
    %c0_i32_0 = arith.constant 0 : i32
    %c0_i32_1 = arith.constant 0 : i32
    return %c0_i32, %c0_i32_0 : i32, i32
  }
  func.func @transform_3(%arg0: i32) -> (i32, i32) {
    %c0_i32 = arith.constant 0 : i32
    %c0_i32_0 = arith.constant 0 : i32
    %c0_i32_1 = arith.constant 0 : i32
    return %c0_i32, %c0_i32_0 : i32, i32
  }
  func.func @transform_4(%arg0: i32) -> (i32, i32) {
    %c0_i32 = arith.constant 0 : i32
    %c0_i32_0 = arith.constant 0 : i32
    %c0_i32_1 = arith.constant 0 : i32
    return %c0_i32, %c0_i32_0 : i32, i32
  }
  func.func @transform_5(%arg0: i32) -> (i32, i32) {
    %c0_i32 = arith.constant 0 : i32
    %c0_i32_0 = arith.constant 0 : i32
    return %arg0, %c0_i32 : i32, i32
  }
}

</mosaic_0001>

<bundles_post_ra>
// kernel: tpu_custom_call.1
= control target key start
LH: loop header
LB: loop body
LE: loop exit
PB: predicated region body
PF: predicated region fallthrough
CT: control target
= control target key end

     0   :  { %10 = vsyncpa [#allocation3], 0  ;;  %s313_s0 = inlined_call_operand.vmem [shape: f32[8,138], index: 0, kind: input, shape index: {}]   ;;  %s314_s1 = inlined_call_operand.hbm [shape: f32[138,74], index: 1, kind: input, shape index: {}]   ;;  %s315_s2 = inlined_call_operand.vmem [shape: f32[1,74], index: 2, kind: input, shape index: {}]   ;;  %s316_s3 = inlined_call_operand.vmem [shape: f32[74,8], index: 3, kind: input, shape index: {}]   ;;  %s317_s4 = inlined_call_operand.vmem [shape: f32[1,8], index: 4, kind: input, shape index: {}]   ;;  %s318_s5 = inlined_call_operand.hbm [shape: f32[8,8], index: 5, kind: output, shape index: {}]  }
   0x1   :  { %11 = vsyncpa [#allocation4], 0  ;;  %s18_s20 = sshll.u32 %s314_s1, 4  ;;  %s231_s21 = smov [#allocation2]   ;;  %s19_s20 = int_to_ptr.hbm [resolvable:$true] %s18_s20 }
   0x2   :  { %s20_s22 = sshll.u32 %s231_s21, 4  ;;  %s232_s23 = smov 128   ;;  %s21_s22 = int_to_ptr.vmem [resolvable:$true] %s20_s22 }
   0x3   :  { %s233_s24 = smov 8  }
   0x4   :  { %26 = dma.hbm_to_vmem [thread:$0]  %s19_s20, 2304, %s21_s22, [#allocation3], %s232_s23, %s232_s23, %s233_s24  }
   0x5   :  { %227 = dma.done.wait [#allocation3], 2304  }
   0x6   :  { %228 = vsyncadd [#allocation3], 4294964992  ;;  %v54_v0 = vld [vmem:[#allocation2 + $0x78] sm:$0xff]  ;;  %v53_v1 = vld [vmem:[#allocation2 + $0x70] sm:$0xff]  ;;  %vm65_vm0 = vcmask 1041408   ;;  %vm61_vm1 = vcmask 80896  }
   0x7   :  { %69 = vmatpush.msra.mxu0 %v54_v0  ;;  %v52_v2 = vld [vmem:[#allocation2 + $0x68] sm:$0xff]  ;;  %v51_v3 = vld [vmem:[#allocation2 + $0x60] sm:$0xff]  ;;  %v50_v4 = vld [vmem:[#allocation2 + $0x58] sm:$0xff]  ;;  %vm123_vm2 = vcmask 605184   ;;  %s234_s25 = smov [#allocation5]   ;;  %vm150_vm3 = vcmask 64512  }
   0x8   :  { %v56_v5 = vld [vmem:[#allocation2 + $0x88] sm:$0x3]  ;;  %v55_v6 = vld [vmem:[#allocation2 + $0x80] sm:$0xff]  ;;  %v49_v10 = vld [vmem:[#allocation2 + $0x50] sm:$0xff]  ;;  %s157_s26 = sshll.u32 %s234_s25, 4  ;;  %s158_s26 = int_to_ptr.vmem [resolvable:$true] %s157_s26 }
   0x9   :  { %70 = vmatpush.msra.mxu0 %v53_v1  ;;  %169 = vmatpush.msk.msra.mxu1 %vm65_vm0, %v56_v5  ;;  %v38_v7 = vld [vmem:[%s313_s0 + $0x8] sm:$0xff]  ;;  %v117_v9 = vld [vmem:[%s316_s3 + $0x40] sm:$0xff]  ;;  %v116_v11 = vld [vmem:[%s316_s3 + $0x38] sm:$0xff] }
   0xa   :  { %v118_v8 = vld [vmem:[%s316_s3 + $0x48] sm:$0x3]  ;;  %v115_v13 = vld [vmem:[%s316_s3 + $0x30] sm:$0xff]  ;;  %v47_v14 = vld [vmem:[#allocation2 + $0x40] sm:$0xff] }
   0xb   :  { %71 = vmatpush.msra.mxu0 %v52_v2  ;;  %171 = vmatpush.msk.msra.mxu2 %vm65_vm0, %v118_v8  ;;  %v48_v12 = vld [vmem:[#allocation2 + $0x48] sm:$0xff]  ;;  %v46_v16 = vld [vmem:[#allocation2 + $0x38] sm:$0xff]  ;;  %v113_v17 = vld [vmem:[%s316_s3 + $0x20] sm:$0xff] }
   0xc   :  { %104 = vmatpush.msra.mxu1 %v55_v6  ;;  %v114_v15 = vld [vmem:[%s316_s3 + $0x28] sm:$0xff]  ;;  %v45_v18 = vld [vmem:[#allocation2 + $0x30] sm:$0xff]  ;;  %v112_v19 = vld [vmem:[%s316_s3 + $0x18] sm:$0xff] }
   0xd   :  { %72 = vmatpush.msra.mxu0 %v51_v3  ;;  %170 = vmatmul.msk.f32.vlgmr.msra.gmra.mxu1 %vm61_vm1, %v38_v7  ;;  %v44_v20 = vld [vmem:[#allocation2 + $0x28] sm:$0xff]  ;;  %v43_v21 = vld [vmem:[#allocation2 + $0x20] sm:$0xff]  ;;  %v42_v22 = vld [vmem:[#allocation2 + $0x18] sm:$0xff] }
   0xe   :  { %137 = vmatpush.msra.mxu2 %v117_v9  ;;  %v41_v23 = vld [vmem:[#allocation2 + $0x10] sm:$0xff]  ;;  %v40_v24 = vld [vmem:[#allocation2 + $0x8] sm:$0xff]  ;;  %v39_v25 = vld [vmem:[#allocation2] sm:$0xff] }
   0xf   :  { %73 = vmatpush.msra.mxu0 %v50_v4  ;;  %v37_v26 = vld [vmem:[%s313_s0] sm:$0xff]  ;;  %v111_v27 = vld [vmem:[%s316_s3 + $0x10] sm:$0xff]  ;;  %v110_v28 = vld [vmem:[%s316_s3 + $0x8] sm:$0xff] }
  0x10   :  { %138 = vmatpush.msra.mxu2 %v116_v11  ;;  %v109_v29 = vld [vmem:[%s316_s3] sm:$0xff]  ;;  %s159_s3 = sshll.u32 %s318_s5, 4  ;;  %s160_s3 = int_to_ptr.hbm [resolvable:$true] %s159_s3 }
  0x11   :  { %74 = vmatpush.msra.mxu0 %v49_v10  ;;  %v177_v30 = vld [vmem:[%s315_s2] ss:$0 sm:$0xff] }
  0x12   :  { %139 = vmatpush.msra.mxu2 %v115_v13  ;;  %v178_v35 = vld [vmem:[%s317_s4] ss:$0 sm:$0xff] }
  0x13   :  { %75 = vmatpush.msra.mxu0 %v48_v12 }
  0x14   :  { %140 = vmatpush.msra.mxu2 %v114_v15 }
  0x15   :  { %76 = vmatpush.msra.mxu0 %v47_v14 }
  0x16   :  { %141 = vmatpush.msra.mxu2 %v113_v17 }
  0x17   :  { %77 = vmatpush.msra.mxu0 %v46_v16 }
  0x18   :  { %142 = vmatpush.msra.mxu2 %v112_v19 }
  0x19   :  { %78 = vmatpush.msra.mxu0 %v45_v18 }
  0x1a   :  { %143 = vmatpush.msra.mxu2 %v111_v27 }
  0x1b   :  { %79 = vmatpush.msra.mxu0 %v44_v20 }
  0x1c   :  { %144 = vmatpush.msra.mxu2 %v110_v28 }
  0x1d   :  { %80 = vmatpush.msra.mxu0 %v43_v21 }
  0x1e   :  { %145 = vmatpush.msra.mxu2 %v109_v29 }
  0x1f   :  { %81 = vmatpush.msra.mxu0 %v42_v22 }
  0x21   :  { %82 = vmatpush.msra.mxu0 %v41_v23 }
  0x23   :  { %83 = vmatpush.msra.mxu0 %v40_v24 }
  0x25   :  { %84 = vmatpush.msra.mxu0 %v39_v25 }
  0x26   :  { %85 = vmatmul.f32.vlgmr.msra.gmra.mxu0 %v37_v26 }
  0x8a   :  { %v106_v32 = vpop.f32.mrf.mxu1 }
  0xa3   :  { %v86_v31 = vpop.f32.mrf.mxu0 }
  0xa4   :  { %v87_v33 = vadd.f32 %v177_v30, %v86_v31 }
  0xa6   :  { %v107_v34 = vadd.f32 %v106_v32, %v87_v33 }
  0xa8   :  { %172 = vmatmul.msk.f32.vlgmr.msra.gmra.mxu2 %vm123_vm2, %v107_v34 }
 0x12b   :  { %v147_v36 = vpop.f32.mrf.mxu2 }
 0x12c   :  { %v148_v37 = vadd.f32 %v178_v35, %v147_v36 }
 0x12e   :  { %151 = vst.msk [vmem:[#allocation5] sm:$0xff] %vm150_vm3, %v148_v37 }
 0x12f   :  { %162 = dma.vmem_to_hbm [thread:$0]  %s158_s26, 128, %s160_s3, [#allocation4]  }
 0x130   :  { %229 = dma.done.wait [#allocation4], 128  }
 0x131   :  { %230 = vsyncadd [#allocation4], 4294967168 }
 0x132   :  { %167 = vsyncpa [#allocation3], 1 }
 0x133   :  { %168 = vsyncpa [#allocation4], 1 }

</bundles_post_ra>
